<compile_context>
chip_gen: v6e
topology: v6e:2x2x1
jax: 0.10.0
libtpu: 0.0.40
codegen_flags: <defaults>
</compile_context>

<pallas_src>
import functools

import jax
import jax.numpy as jnp
from jax.experimental import pallas as pl
from jax.experimental.pallas import tpu as pltpu


def _round_up(x, m=8):
    return (x + m - 1) // m * m


def gat_kernel(inp_ref, adj_ref, p_ref, out_ref, *,
               alpha, f_in, f_out, r_wg, r_b):
    x = inp_ref[...]                                          # (N, F_in)
    adj = adj_ref[...]                                        # (N, N)

    # Packed, pre-transposed parameters (single VMEM block, 8-aligned rows).
    w_x = p_ref[0:f_in, :]                                    # (F_in, 3*F_out+2)
    w_gr = p_ref[r_wg:r_wg + f_out, 0:f_out]                  # (F_out, F_out) gate weight on ret
    bias2 = p_ref[r_b:r_b + 2, :]                             # rows [b_x ; b_gate]
    b_x = bias2[0:1, :]                                       # (1, 3*F_out+2)
    b_g = bias2[1:2, 0:f_out]                                 # (1, F_out)

    # ONE MXU pass over x:
    #   [seq_fts | linear_proj(x) | folded gate-inp term | f1 | f2].
    proj = jnp.dot(x, w_x, preferred_element_type=jnp.float32) + b_x
    seq = proj[:, 0:f_out]                                    # seq_transformation output
    inp_p = proj[:, f_out:2 * f_out]                          # linear_proj output
    gate_x = proj[:, 2 * f_out:3 * f_out]                     # inp_p @ Wg_inp^T (bias folded)
    f12 = proj[:, 3 * f_out:3 * f_out + 2]                    # [f1 | f2]  (N, 2)

    # logits[i, j] = f1[i] + f2[j]
    logits = f12[:, 0:1] + jnp.transpose(f12[:, 1:2])         # (N, N)

    # coef = softmax(leaky_relu(logits) + adj, dim=1), max-stabilized.
    z = jnp.where(logits > 0, logits, alpha * logits) + adj
    z = z - jnp.max(z, axis=1, keepdims=True)
    e = jnp.exp(z)
    s = jnp.sum(e, axis=1, keepdims=True)
    r = pl.reciprocal(s, approx=True)                         # EUP slot
    r = r * (2.0 - s * r)                                     # one Newton-Raphson step
    coef = e * r                                              # (N, N)

    # TODO(synk): seq_droput is eval-mode identity (no dropout), and
    # output_leakyrelu(seq_fts) is computed-but-unused in the PyTorch forward,
    # so both are omitted.
    ret = jnp.dot(coef, seq, preferred_element_type=jnp.float32)      # (N, F_out)

    # update_gate on cat([ret, inp_proj]): ret-half is this matmul, the
    # inp-half was folded into `proj` (gate_x); b_gate added here.
    up = jax.nn.sigmoid(
        jnp.dot(ret, w_gr, preferred_element_type=jnp.float32) + gate_x + b_g)

    out_ref[...] = inp_p + up * (ret - inp_p)


def pack_params(params):
    """Pre-transpose, fuse and pack all layer parameters into one VMEM block.

    Called ONCE (outside the jitted forward).  Layout (rows x cols):
      rows [0, F_in)          : w_x = [w_seq^T | w_proj^T | w_proj^T Wg_inp^T | w_seq^T w_f]
      rows [r_wg, r_wg+F_out) : Wg_ret^T                      (cols [0, F_out))
      row   r_b               : fused bias b_x
      row   r_b + 1           : b_gate                        (cols [0, F_out))
    """
    f_out, f_in = params["w_seq"].shape
    w_gate_ret = params["w_gate"][:, :f_out]                  # acts on ret
    w_gate_inp = params["w_gate"][:, f_out:]                  # acts on linear_proj(x)

    w_f = jnp.concatenate([params["w_f1"].T, params["w_f2"].T], axis=1)   # (F_out, 2)
    b_f = jnp.concatenate([params["b_f1"], params["b_f2"]])               # (2,)

    # x-side fusion: seq, proj, gate-inp term, and f1/f2 all consume x.
    w_x = jnp.concatenate(
        [params["w_seq"].T,
         params["w_proj"].T,
         params["w_proj"].T @ w_gate_inp.T,
         params["w_seq"].T @ w_f], axis=1)                    # (F_in, 3*F_out+2)
    b_x = jnp.concatenate(
        [params["b_seq"],
         params["b_proj"],
         params["b_proj"] @ w_gate_inp.T,
         params["b_seq"] @ w_f + b_f])                        # (3*F_out+2,)

    cols = 3 * f_out + 2
    r_wg = _round_up(f_in)
    r_b = r_wg + _round_up(f_out)
    rows = _round_up(r_b + 2)

    pack = jnp.zeros((rows, cols), jnp.float32)
    pack = pack.at[0:f_in, :].set(w_x)
    pack = pack.at[r_wg:r_wg + f_out, 0:f_out].set(w_gate_ret.T)
    pack = pack.at[r_b, :].set(b_x)
    pack = pack.at[r_b + 1, 0:f_out].set(params["b_gate"])
    meta = dict(f_in=int(f_in), f_out=int(f_out), r_wg=int(r_wg), r_b=int(r_b))
    return pack, meta


def _gat_pallas(inp_b, adj_b, p_pack, *, alpha, f_in, f_out, r_wg, r_b):
    """Batched launch: inp_b (B, N, F_in), adj_b (B, N, N) -> (B, N, F_out)."""
    bsz, n, _ = inp_b.shape
    rows, cols = p_pack.shape
    kernel = functools.partial(gat_kernel, alpha=alpha, f_in=f_in, f_out=f_out,
                               r_wg=r_wg, r_b=r_b)
    return pl.pallas_call(
        kernel,
        out_shape=jax.ShapeDtypeStruct((bsz, n, f_out), jnp.float32),
        grid=(bsz,),
        in_specs=[
            pl.BlockSpec((None, n, f_in), lambda b: (b, 0, 0)),
            pl.BlockSpec((None, n, n), lambda b: (b, 0, 0)),
            pl.BlockSpec((rows, cols), lambda b: (0, 0)),
        ],
        out_specs=pl.BlockSpec((None, n, f_out), lambda b: (b, 0, 0)),
        compiler_params=pltpu.CompilerParams(
            dimension_semantics=("parallel",),          # v7x: shard graphs over both TCs
            vmem_limit_bytes=32 * 1024 * 1024),
    )(inp_b, adj_b, p_pack)


@functools.partial(jax.jit,
                   static_argnames=("alpha", "f_in", "f_out", "r_wg", "r_b"))
def gat_forward(inp, adj, p_pack, *, alpha, f_in, f_out, r_wg, r_b):
    """Single-graph forward matching the PyTorch module: (N,F_in),(N,N)->(N,F_out)."""
    out = _gat_pallas(inp[None], adj[None], p_pack, alpha=alpha,
                      f_in=f_in, f_out=f_out, r_wg=r_wg, r_b=r_b)
    return out[0]


@functools.partial(jax.jit,
                   static_argnames=("alpha", "f_in", "f_out", "r_wg", "r_b"))
def gat_forward_batched(inp_b, adj_b, p_pack, *, alpha, f_in, f_out, r_wg, r_b):
    """Batch of independent graphs; one 'parallel' grid axis."""
    return _gat_pallas(inp_b, adj_b, p_pack, alpha=alpha,
                       f_in=f_in, f_out=f_out, r_wg=r_wg, r_b=r_b)


def gat_reference(inp, adj, params, alpha):
    """Pure-JAX mirror of the PyTorch forward (eval mode)."""
    seq = inp @ params["w_seq"].T + params["b_seq"]
    f1 = seq @ params["w_f1"].T + params["b_f1"]              # (N, 1)
    f2 = seq @ params["w_f2"].T + params["b_f2"]              # (N, 1)
    logits = f1 + f2.T
    coef = jax.nn.softmax(jnp.where(logits > 0, logits, alpha * logits) + adj, axis=1)
    ret = coef @ seq
    inp_p = inp @ params["w_proj"].T + params["b_proj"]
    up = jax.nn.sigmoid(
        jnp.concatenate([ret, inp_p], axis=1) @ params["w_gate"].T + params["b_gate"])
    return up * ret + (1.0 - up) * inp_p


if __name__ == "__main__":
    N = 8          # number of graph nodes
    F_IN = 32      # in_features
    F_OUT = 16     # out_features (!= in_features -> linear_proj branch active)
    ALPHA = 0.2    # LeakyReLU negative slope
    BATCH = 2      # batched demo (exercises the 'parallel' grid axis)

    key = jax.random.PRNGKey(0)
    keys = jax.random.split(key, 14)

    inp = jax.random.normal(keys[0], (N, F_IN), dtype=jnp.float32)
    adj = jax.random.normal(keys[1], (N, N), dtype=jnp.float32)
    inp_b = jax.random.normal(keys[12], (BATCH, N, F_IN), dtype=jnp.float32)
    adj_b = jax.random.normal(keys[13], (BATCH, N, N), dtype=jnp.float32)

    def init(k, shape, scale=0.1):
        return (scale * jax.random.normal(k, shape)).astype(jnp.float32)

    # Parameters in PyTorch layouts: Conv1d(k=1) weight (out, in), Linear (out, in).
    params = {
        "w_seq":  init(keys[2], (F_OUT, F_IN)),
        "b_seq":  init(keys[3], (F_OUT,)),
        "w_f1":   init(keys[4], (1, F_OUT)),
        "b_f1":   init(keys[5], (1,)),
        "w_f2":   init(keys[6], (1, F_OUT)),
        "b_f2":   init(keys[7], (1,)),
        "w_proj": init(keys[8], (F_OUT, F_IN)),
        "b_proj": init(keys[9], (F_OUT,)),
        "w_gate": init(keys[10], (F_OUT, 2 * F_OUT)),
        "b_gate": init(keys[11], (F_OUT,)),
    }

    # Pack parameters ONCE (outside the jitted per-call path).
    p_pack, meta = pack_params(params)
    p_pack = jax.block_until_ready(p_pack)

    # Single-graph forward (matches the PyTorch module's forward).
    out = gat_forward(inp, adj, p_pack, alpha=ALPHA, **meta)
    out = jax.block_until_ready(out)
    ref = gat_reference(inp, adj, params, ALPHA)
    assert out.shape == (N, F_OUT)
    assert jnp.allclose(out, ref, atol=1e-5, rtol=1e-5), float(jnp.max(jnp.abs(out - ref)))

    # Batched forward (one pallas_call, 'parallel' grid over graphs).
    out_b = gat_forward_batched(inp_b, adj_b, p_pack, alpha=ALPHA, **meta)
    out_b = jax.block_until_ready(out_b)
    for b in range(BATCH):
        ref_b = gat_reference(inp_b[b], adj_b[b], params, ALPHA)
        assert jnp.allclose(out_b[b], ref_b, atol=1e-5, rtol=1e-5), \
            float(jnp.max(jnp.abs(out_b[b] - ref_b)))

    print("KERNEL_OK")
</pallas_src>

<mosaic_0001>
module attributes {stable_mosaic.version = 11 : i64} {
  func.func @gat_kernel(%arg0: i32, %arg1: memref<1x8x32xf32, #tpu.memory_space<vmem>>, %arg2: memref<1x8x8xf32, #tpu.memory_space<vmem>>, %arg3: memref<56x50xf32, #tpu.memory_space<vmem>>, %arg4: memref<1x8x16xf32, #tpu.memory_space<vmem>>) attributes {dimension_semantics = [#tpu.dimension_semantics<parallel>], iteration_bounds = array<i64: 1>, scalar_prefetch = 0 : i64, scratch_operands = 0 : i64, tpu.core_type = #tpu.core_type<tc>, window_params = [{transform_indices = @transform_0, window_bounds = array<i64: 1, 8, 32>}, {transform_indices = @transform_1, window_bounds = array<i64: 1, 8, 8>}, {pipeline_mode = #tpu.pipeline_mode<synchronous>, transform_indices = @transform_2, window_bounds = array<i64: 56, 50>}, {transform_indices = @transform_3, window_bounds = array<i64: 1, 8, 16>}]} {
    %c0 = arith.constant 0 : index
    %c0_0 = arith.constant 0 : index
    %c0_1 = arith.constant 0 : index
    %0 = vector.load %arg1[%c0, %c0_0, %c0_1] : memref<1x8x32xf32, #tpu.memory_space<vmem>>, vector<1x8x32xf32>
    %1 = vector.shape_cast %0 : vector<1x8x32xf32> to vector<8x32xf32>
    %c0_2 = arith.constant 0 : index
    %c0_3 = arith.constant 0 : index
    %c0_4 = arith.constant 0 : index
    %2 = vector.load %arg2[%c0_2, %c0_3, %c0_4] : memref<1x8x8xf32, #tpu.memory_space<vmem>>, vector<1x8x8xf32>
    %3 = vector.shape_cast %2 : vector<1x8x8xf32> to vector<8x8xf32>
    %c0_5 = arith.constant 0 : index
    %c0_6 = arith.constant 0 : index
    %4 = vector.load %arg3[%c0_5, %c0_6] : memref<56x50xf32, #tpu.memory_space<vmem>>, vector<32x50xf32>
    %c32 = arith.constant 32 : index
    %c0_7 = arith.constant 0 : index
    %5 = vector.load %arg3[%c32, %c0_7] : memref<56x50xf32, #tpu.memory_space<vmem>>, vector<16x16xf32>
    %c48 = arith.constant 48 : index
    %c0_8 = arith.constant 0 : index
    %6 = vector.load %arg3[%c48, %c0_8] : memref<56x50xf32, #tpu.memory_space<vmem>>, vector<2x50xf32>
    %7 = vector.extract_strided_slice %6 {offsets = [0, 0], sizes = [1, 50], strides = [1, 1]} : vector<2x50xf32> to vector<1x50xf32>
    %8 = vector.extract_strided_slice %6 {offsets = [1, 0], sizes = [1, 16], strides = [1, 1]} : vector<2x50xf32> to vector<1x16xf32>
    %cst = arith.constant dense<0.000000e+00> : vector<8x50xf32>
    %9 = tpu.matmul %1, %4, %cst {dimension_numbers = #tpu.dot_dimension_numbers<[1], [0], [0], [1], [0, 0, 1, 1], [], []>} : vector<8x32xf32>, vector<32x50xf32>, vector<8x50xf32> -> vector<8x50xf32>
    %10 = vector.broadcast %7 : vector<1x50xf32> to vector<8x50xf32>
    %11 = arith.addf %9, %10 : vector<8x50xf32>
    %12 = vector.extract_strided_slice %11 {offsets = [0, 0], sizes = [8, 16], strides = [1, 1]} : vector<8x50xf32> to vector<8x16xf32>
    %13 = vector.extract_strided_slice %11 {offsets = [0, 16], sizes = [8, 16], strides = [1, 1]} : vector<8x50xf32> to vector<8x16xf32>
    %14 = vector.extract_strided_slice %11 {offsets = [0, 32], sizes = [8, 16], strides = [1, 1]} : vector<8x50xf32> to vector<8x16xf32>
    %15 = vector.extract_strided_slice %11 {offsets = [0, 48], sizes = [8, 2], strides = [1, 1]} : vector<8x50xf32> to vector<8x2xf32>
    %16 = vector.extract_strided_slice %15 {offsets = [0, 0], sizes = [8, 1], strides = [1, 1]} : vector<8x2xf32> to vector<8x1xf32>
    %17 = vector.extract_strided_slice %15 {offsets = [0, 1], sizes = [8, 1], strides = [1, 1]} : vector<8x2xf32> to vector<8x1xf32>
    %18 = tpu.transpose %17, [1, 0] : vector<8x1xf32> -> vector<1x8xf32>
    %19 = vector.broadcast %16 : vector<8x1xf32> to vector<8x8xf32>
    %20 = vector.broadcast %18 : vector<1x8xf32> to vector<8x8xf32>
    %21 = arith.addf %19, %20 : vector<8x8xf32>
    %cst_9 = arith.constant 0.000000e+00 : f32
    %22 = vector.broadcast %cst_9 : f32 to vector<8x8xf32>
    %23 = arith.cmpf ogt, %21, %22 : vector<8x8xf32>
    %cst_10 = arith.constant 2.000000e-01 : f32
    %24 = vector.broadcast %cst_10 : f32 to vector<8x8xf32>
    %25 = arith.mulf %24, %21 : vector<8x8xf32>
    %26 = arith.select %23, %21, %25 : vector<8x8xi1>, vector<8x8xf32>
    %27 = arith.addf %26, %3 : vector<8x8xf32>
    %cst_11 = arith.constant dense<0xFF800000> : vector<8xf32>
    %28 = vector.multi_reduction <maximumf>, %27, %cst_11 [1] : vector<8x8xf32> to vector<8xf32>
    %29 = vector.shape_cast %28 : vector<8xf32> to vector<8x1xf32>
    %30 = vector.broadcast %29 : vector<8x1xf32> to vector<8x8xf32>
    %31 = arith.subf %27, %30 : vector<8x8xf32>
    %32 = math.exp %31 : vector<8x8xf32>
    %cst_12 = arith.constant dense<0.000000e+00> : vector<8xf32>
    %33 = vector.multi_reduction <add>, %32, %cst_12 [1] : vector<8x8xf32> to vector<8xf32>
    %34 = vector.shape_cast %33 : vector<8xf32> to vector<8x1xf32>
    %35 = tpu.reciprocal %34 {approx = true} : vector<8x1xf32> -> vector<8x1xf32>
    %36 = arith.mulf %34, %35 : vector<8x1xf32>
    %cst_13 = arith.constant 2.000000e+00 : f32
    %37 = vector.broadcast %cst_13 : f32 to vector<8x1xf32>
    %38 = arith.subf %37, %36 : vector<8x1xf32>
    %39 = arith.mulf %35, %38 : vector<8x1xf32>
    %40 = vector.broadcast %39 : vector<8x1xf32> to vector<8x8xf32>
    %41 = arith.mulf %32, %40 : vector<8x8xf32>
    %cst_14 = arith.constant dense<0.000000e+00> : vector<8x16xf32>
    %42 = tpu.matmul %41, %12, %cst_14 {dimension_numbers = #tpu.dot_dimension_numbers<[1], [0], [0], [1], [0, 0, 1, 1], [], []>} : vector<8x8xf32>, vector<8x16xf32>, vector<8x16xf32> -> vector<8x16xf32>
    %cst_15 = arith.constant dense<0.000000e+00> : vector<8x16xf32>
    %43 = tpu.matmul %42, %5, %cst_15 {dimension_numbers = #tpu.dot_dimension_numbers<[1], [0], [0], [1], [0, 0, 1, 1], [], []>} : vector<8x16xf32>, vector<16x16xf32>, vector<8x16xf32> -> vector<8x16xf32>
    %44 = arith.addf %43, %14 : vector<8x16xf32>
    %45 = vector.broadcast %8 : vector<1x16xf32> to vector<8x16xf32>
    %46 = arith.addf %44, %45 : vector<8x16xf32>
    %47 = arith.negf %46 : vector<8x16xf32>
    %48 = math.exp %47 : vector<8x16xf32>
    %cst_16 = arith.constant 1.000000e+00 : f32
    %49 = vector.broadcast %cst_16 : f32 to vector<8x16xf32>
    %50 = arith.addf %49, %48 : vector<8x16xf32>
    %51 = arith.divf %49, %50 : vector<8x16xf32>
    %52 = arith.subf %42, %13 : vector<8x16xf32>
    %53 = arith.mulf %51, %52 : vector<8x16xf32>
    %54 = arith.addf %13, %53 : vector<8x16xf32>
    %c0_17 = arith.constant 0 : index
    %c0_18 = arith.constant 0 : index
    %c0_19 = arith.constant 0 : index
    %55 = vector.load %arg4[%c0_17, %c0_18, %c0_19] : memref<1x8x16xf32, #tpu.memory_space<vmem>>, vector<1x8x16xf32>
    %56 = vector.shape_cast %55 : vector<1x8x16xf32> to vector<8x16xf32>
    %57 = vector.shape_cast %54 : vector<8x16xf32> to vector<1x8x16xf32>
    tpu.vector_store %arg4[%c0_17, %c0_18, %c0_19], %57 {strides = array<i32>} : memref<1x8x16xf32, #tpu.memory_space<vmem>>, vector<1x8x16xf32>,
    return
  }
  func.func @transform_0(%arg0: i32) -> (i32, i32, i32) {
    %c0_i32 = arith.constant 0 : i32
    %c0_i32_0 = arith.constant 0 : i32
    %c0_i32_1 = arith.constant 0 : i32
    return %arg0, %c0_i32, %c0_i32_0 : i32, i32, i32
  }
  func.func @transform_1(%arg0: i32) -> (i32, i32, i32) {
    %c0_i32 = arith.constant 0 : i32
    %c0_i32_0 = arith.constant 0 : i32
    %c0_i32_1 = arith.constant 0 : i32
    return %arg0, %c0_i32, %c0_i32_0 : i32, i32, i32
  }
  func.func @transform_2(%arg0: i32) -> (i32, i32) {
    %c0_i32 = arith.constant 0 : i32
    %c0_i32_0 = arith.constant 0 : i32
    %c0_i32_1 = arith.constant 0 : i32
    return %c0_i32, %c0_i32_0 : i32, i32
  }
  func.func @transform_3(%arg0: i32) -> (i32, i32, i32) {
    %c0_i32 = arith.constant 0 : i32
    %c0_i32_0 = arith.constant 0 : i32
    %c0_i32_1 = arith.constant 0 : i32
    return %arg0, %c0_i32, %c0_i32_0 : i32, i32, i32
  }
}

</mosaic_0001>

<bundles_post_ra>
// kernel: gat_forward.1
= control target key start
LH: loop header
LB: loop body
LE: loop exit
PB: predicated region body
PF: predicated region fallthrough
CT: control target
= control target key end

     0   :  { %8 = vsyncpa [#allocation3], 0  ;;  %s613_s0 = inlined_call_operand.hbm [shape: f32[1,8,32], index: 0, kind: input, shape index: {}]   ;;  %s614_s1 = inlined_call_operand.hbm [shape: f32[1,8,8], index: 1, kind: input, shape index: {}]   ;;  %s615_s2 = inlined_call_operand.hbm [shape: f32[56,50], index: 2, kind: input, shape index: {}]   ;;  %s616_s3 = inlined_call_operand.hbm [shape: f32[1,8,16], index: 3, kind: output, shape index: {}]  }
   0x1   :  { %9 = vsyncpa [#allocation6], 0 }
   0x2   :  { %10 = vsyncpa [#allocation4], 0  ;;  %s540_s12 = smov [#allocation5]   ;;  %s541_s14 = smov [#allocation2]  }
   0x3   :  { %s27_s13 = sshll.u32 %s540_s12, 4  ;;  %s17_s15 = sshll.u32 %s541_s14, 4  ;;  %s28_s13 = int_to_ptr.vmem [resolvable:$true] %s27_s13  ;;  %s18_s15 = int_to_ptr.vmem [resolvable:$true] %s17_s15 }
   0x4   :  { %s462_s16 = scalar_lea.vmem %s28_s13, 128  ;;  %p467_p1 = scmp.lt.s32.totalorder %s28_s13, %s28_s13 }
   0x5   :  { %p463_p0 = scmp.ne.s32.totalorder %s28_s13, %s462_s16  ;;  %p468_p2 = scmp.lt.s32.totalorder %s462_s16, %s462_s16 }
   0x7   :  { %p469_p3 = por %p468_p2, %p467_p1 }
   0x9   :  { %p470_p4 = pnand %p469_p3, %p463_p0 }
   0xb   :  { %473 = shalt.err (!%p470_p4)
}
   0xc   :  { %30 = dma.hbm_to_vmem [thread:$0]  %s614_s1, 128, %s28_s13, [#allocation6]  }
   0xd   :  { %s482_s19 = scalar_lea.vmem %s18_s15, 128  ;;  %p487_p6 = scmp.lt.s32.totalorder %s18_s15, %s18_s15 }
   0xe   :  { %p483_p5 = scmp.ne.s32.totalorder %s18_s15, %s482_s19  ;;  %p488_p7 = scmp.lt.s32.totalorder %s482_s19, %s482_s19 }
  0x10   :  { %p489_p8 = por %p488_p7, %p487_p6 }
  0x12   :  { %p490_p9 = pnand %p489_p8, %p483_p5 }
  0x14   :  { %493 = shalt.err (!%p490_p9)
}
  0x15   :  { %20 = dma.hbm_to_vmem [thread:$0]  %s613_s0, 128, %s18_s15, [#allocation3]  }
  0x16   :  { %s542_s22 = smov [#allocation7]  }
  0x17   :  { %s36_s23 = sshll.u32 %s542_s22, 4  ;;  %s37_s23 = int_to_ptr.vmem [resolvable:$true] %s36_s23 }
  0x18   :  { %s502_s24 = scalar_lea.vmem %s37_s23, 896  ;;  %p507_p11 = scmp.lt.s32.totalorder %s37_s23, %s37_s23 }
  0x19   :  { %p503_p10 = scmp.ne.s32.totalorder %s37_s23, %s502_s24  ;;  %p508_p12 = scmp.lt.s32.totalorder %s502_s24, %s502_s24 }
  0x1b   :  { %p509_p13 = por %p508_p12, %p507_p11 }
  0x1d   :  { %p510_p0 = pnand %p509_p13, %p503_p10 }
  0x1f   :  { %513 = shalt.err (!%p510_p0)
}
  0x20   :  { %s543_s1 = smov 128   ;;  %s544_s25 = smov 8  }
  0x21   :  { %42 = dma.hbm_to_vmem [thread:$0]  %s615_s2, 896, %s37_s23, [#allocation6], %s543_s1, %s543_s1, %s544_s25  }
  0x22   :  { %534 = dma.done.wait [#allocation3], 128  }
  0x23   :  { %535 = vsyncadd [#allocation3], 4294967168 }
  0x24   :  { %536 = dma.done.wait [#allocation6], 1024  }
  0x25   :  { %537 = vsyncadd [#allocation6], 4294966272  ;;  %v545_v0 = vmov 0.0   ;;  %vm546_vm0 = vmmov 0   ;;  %v57_v1 = vld [vmem:[#allocation7 + $0x18] sm:$0xff]  ;;  %v56_v2 = vld [vmem:[#allocation7 + $0x10] sm:$0xff]  ;;  %v61_v7 = vlaneseq }
  0x26   :  { %409 = vmatprep.subr.mxu0 %v545_v0  ;;  %417 = vmatprep.mubr.msk.f32.mxu0 %vm546_vm0, %v545_v0  ;;  %v55_v3 = vld [vmem:[#allocation7 + $0x8] sm:$0xff]  ;;  %v54_v4 = vld [vmem:[#allocation7] sm:$0xff]  ;;  %v52_v5 = vld [vmem:[#allocation2] sm:$0xff]  ;;  %vm65_vm1 = vcmask 261120   ;;  %v547_v6 = vmov 48   ;;  %s548_s0 = smov 79  }
  0x27   :  { %420 = vmatprep.subr.mxu1 %v545_v0  ;;  %422 = vmatprep.mubr.msk.f32.mxu1 %vm546_vm0, %v545_v0  ;;  %v62_v8 = vshrl.u32 %v61_v7, 7  ;;  %v60_v10 = vld [vmem:[#allocation7 + $0x30] sm:$0x3]  ;;  %v53_v21 = vld [vmem:[#allocation5] sm:$0xff]  ;;  %vm188_vm3 = vcmask 64512   ;;  %s549_s2 = smov 112  }
  0x28   :  { %410 = vmatpush3.msra.mxu0 %v57_v1  ;;  %445 = vset.pattern.permute.xlu0 %v547_v6  ;;  %s550_s28 = smov 96   ;;  %v59_v36 = vld [vmem:[#allocation7 + $0x28] sm:$0xff]  ;;  %v58_v37 = vld [vmem:[#allocation7 + $0x20] sm:$0xff]  ;;  %vm279_vm4 = vcmask 130048   ;;  %s551_s29 = smov 16  }
  0x29   :  { %411 = vmatprep.subr.mxu0 %v545_v0  ;;  %v63_v9 = vsub.s32 0, %v62_v8  ;;  %v355_v40 = vsub.s32 1, %v62_v8  ;;  %s552_s30 = smov [#allocation8]  }
  0x2a   :  { %412 = vmatpush3.msra.mxu0 %v56_v2  ;;  %s385_s4 = sshll.u32 %s552_s30, 4  ;;  %s386_s4 = int_to_ptr.vmem [resolvable:$true] %s385_s4 }
  0x2b   :  { %413 = vmatprep.subr.mxu0 %v545_v0  ;;  %v64_v11 = vrot.slane %v60_v10, %v63_v9  ;;  %v356_v41 = vrot.slane %v60_v10, %v355_v40  ;;  %s514_s5 = scalar_lea.vmem %s386_s4, 128  ;;  %p519_p2 = scmp.lt.s32.totalorder %s386_s4, %s386_s4 }
  0x2c   :  { %414 = vmatpush3.msra.mxu0 %v55_v3  ;;  %p515_p1 = scmp.ne.s32.totalorder %s386_s4, %s514_s5  ;;  %p520_p3 = scmp.lt.s32.totalorder %s514_s5, %s514_s5 }
  0x2d   :  { %415 = vmatprep.subr.mxu0 %v545_v0 }
  0x2e   :  { %416 = vmatpush3.msra.mxu0 %v54_v4  ;;  %p521_p4 = por %p520_p3, %p519_p2 }
  0x2f   :  { %418 = vmatmul.mubr.msk.f32.vlgmr.msra.gmra.mxu0 %vm65_vm1, %v52_v5 }
  0x30   :  { %p522_p5 = pnand %p521_p4, %p515_p1 }
  0xef   :  { %v135_v12 = vpop.f32.mrf.mxu0 }
  0xf0   :  { %v591_v13 = vadd.f32 %v135_v12, %v64_v11 }
  0xf1   :  { %v419_v14 = vpop.f32.mrf.mxu0 }
  0xf2   :  { %140 = vrot.lane.b32.xlu0 %v591_v13, %s548_s0  ;;  %421 = vmatpush3.msra.mxu1 %v591_v13 }
  0xf3   :  { %425 = vmatprep.subr.mxu1 %v545_v0 }
  0xf6   :  { %176 = vperm.xlu0 %445, %v591_v13  }
 0x164   :  { %v141_v15 = vpop.permute.xlu0 %140 }
 0x165   :  { %143 = vxpose.xlu1.b32.start.end [1/1] (short) (narrow) %v141_v15, 8 }
 0x171   :  { %v177_v18 = vpop.permute.xlu0 %176 }
 0x1e1   :  { %v159_v16 = vpop.trf.xlu1 }
 0x1e2   :  { %v182_v17 = vrot.slane %v159_v16, %v63_v9 }
 0x1e4   :  { %v183_v19 = vadd.f32 %v182_v17, %v177_v18 }
 0x1e6   :  { %v185_v20 = vmul.f32 0.2, %v183_v19  ;;  %vm184_vm2 = vcmp.gt.f32.partialorder %v183_v19, 0.0 }
 0x1e8   :  { %v186_v22 = vsel %vm184_vm2, %v183_v19, %v185_v20 }
 0x1e9   :  { %v187_v23 = vadd.f32 %v186_v22, %v53_v21 }
 0x1eb   :  { %v189_v24 = vsel %vm188_vm3, %v187_v23, -inf }
 0x1ec   :  { %190 = vmax.xlane.f32.xlu1 %v189_v24 }
 0x1fd   :  { %364 = vrot.lane.b32.xlu1 %v591_v13, %s549_s2 }
 0x275   :  { %v191_v25 = vpop.xlane.xlu1 %190 }
 0x276   :  { %v192_v26 = vsub.f32 %v187_v23, %v191_v25 }
 0x278   :  { %v193_v27 = vmul.f32 1.442695, %v192_v26 }
 0x279   :  { %v365_v50 = vpop.permute.xlu1 %364 }
 0x27a   :  { %446 = vpow2.f32 %v193_v27 }
 0x287   :  { %v447_v28 = vpop.eup %446 }
 0x288   :  { %v195_v29 = vsel %vm188_vm3, %v447_v28, 0.0 }
 0x289   :  { %196 = vadd.xlane.f32.xlu0 %v195_v29 }
 0x29f   :  { %276 = vrot.lane.b32.xlu0 %v591_v13, %s550_s28 }
 0x312   :  { %v197_v30 = vpop.xlane.xlu0 %196 }
 0x313   :  { %448 = vrcp.f32 %v197_v30 }
 0x316   :  { %v277_v42 = vpop.permute.xlu0 %276 }
 0x320   :  { %v449_v31 = vpop.eup %448 }
 0x321   :  { %v199_v32 = vmul.f32 %v449_v31, %v197_v30 }
 0x323   :  { %v200_v33 = vsub.f32 2.0, %v199_v32 }
 0x325   :  { %v201_v34 = vmul.f32 %v449_v31, %v200_v33 }
 0x327   :  { %v202_v35 = vmul.f32 %v447_v28, %v201_v34 }
 0x329   :  { %423 = vmatmul.mubr.msk.f32.vlgmr.msra.gmra.mxu1 %vm188_vm3, %v202_v35 }
 0x32a   :  { %426 = vmatpush3.msra.mxu1 %v59_v36  ;;  %429 = vmatprep.mubr.msk.f32.mxu1 %vm546_vm0, %v545_v0 }
 0x32b   :  { %427 = vmatprep.subr.mxu1 %v545_v0 }
 0x32c   :  { %428 = vmatpush3.msra.mxu1 %v58_v37 }
 0x3e9   :  { %v272_v38 = vpop.f32.mrf.mxu1 }
 0x3ea   :  { %430 = vmatmul.mubr.msk.f32.vlgmr.msra.gmra.mxu1 %vm279_vm4, %v272_v38  ;;  %v367_v51 = vsub.f32 %v272_v38, %v365_v50 }
 0x3eb   :  { %v424_v39 = vpop.f32.mrf.mxu1 }
 0x4aa   :  { %v349_v43 = vpop.f32.mrf.mxu1 }
 0x4ab   :  { %v350_v44 = vadd.f32 %v349_v43, %v277_v42 }
 0x4ac   :  { %v431_v45 = vpop.f32.mrf.mxu1 }
 0x4ad   :  { %v357_v46 = vadd.f32 %v356_v41, %v350_v44 }
 0x4af   :  { %v398_v47 = vmul.f32 -1.442695, %v357_v46 }
 0x4b1   :  { %450 = vpow2.f32 %v398_v47 }
 0x4be   :  { %v451_v48 = vpop.eup %450 }
 0x4bf   :  { %v361_v49 = vadd.f32 1.0, %v451_v48 }
 0x4c1   :  { %452 = vrcp.f32 %v361_v49 }
 0x4ce   :  { %v453_v52 = vpop.eup %452 }
 0x4cf   :  { %v368_v53 = vmul.f32 %v453_v52, %v367_v51 }
 0x4d1   :  { %370 = vrot.lane.b32.xlu1 %v368_v53, %s551_s29 }
 0x543   :  { %v371_v54 = vpop.permute.xlu1 %370 }
 0x544   :  { %v373_v55 = vadd.f32 %v371_v54, %v591_v13 }
 0x546   :  { %375 = vrot.lane.b32.xlu1 %v373_v55, %s549_s2 }
 0x5b8   :  { %v376_v56 = vpop.permute.xlu1 %375 }
 0x5b9   :  { %378 = vst.msk [vmem:[#allocation8] sm:$0xff] %vm279_vm4, %v376_v56 }
 0x5ba   :  { %525 = shalt.err (!%p522_p5)
}
 0x5bb   :  { %388 = dma.vmem_to_hbm [thread:$0]  %s386_s4, 128, %s616_s3, [#allocation4]  }
 0x5bc   :  { %538 = dma.done.wait [#allocation4], 128  }
 0x5bd   :  { %539 = vsyncadd [#allocation4], 4294967168 }
 0x5be   :  { %392 = vsyncpa [#allocation3], 1 }
 0x5bf   :  { %393 = vsyncpa [#allocation6], 1 }
 0x5c0   :  { %394 = vsyncpa [#allocation4], 1 }

</bundles_post_ra>
